<compile_context>
chip_gen: v7x
topology: tpu7x:2x2x1
jax: 0.10.0
libtpu: 0.0.40
codegen_flags: <defaults>
</compile_context>

<pallas_src>
import jax
import jax.numpy as jnp
from jax.experimental import pallas as pl
from jax.experimental.pallas import tpu as pltpu


# ----------------------------------------------------------------------------
# utilities
# ----------------------------------------------------------------------------
_VMEM_BUDGET = 24 * 1024 * 1024       # target working set for pipelined blocks
_VMEM_LIMIT = 64 * 1024 * 1024        # scoped VMEM limit passed to Mosaic


def _round_up(n, m):
    return ((n + m - 1) // m) * m


def _pick_chunk(total, cap):
    """Largest divisor of `total` that is <= cap."""
    for c in range(min(total, cap), 0, -1):
        if total % c == 0:
            return c
    return 1


def _pick_batch_tile(bp, cap):
    """Batch tile: multiple of 8 (sublane rule) dividing bp, or bp itself."""
    if bp <= cap:
        return bp
    t = (cap // 8) * 8
    while t >= 8:
        if bp % t == 0:
            return t
        t -= 8
    return bp


def _chunk_and_pad(t, cap):
    """Pick a time chunk <= cap and the padded time length it divides."""
    if t <= cap:
        return t, t
    return cap, _round_up(t, cap)


def _cap_from_budget(bytes_per_unit, budget, lo, hi):
    cap = budget // max(int(bytes_per_unit), 1)
    return int(max(lo, min(hi, cap)))


# ----------------------------------------------------------------------------
# Kernel 1: fused fwd+bwd LSTM input projection (hoisted out of the recurrence)
#   gates_dir[t, b, :] = sum_s x_s[t, b, :] @ W_dir_s + bias_dir
# ----------------------------------------------------------------------------
def _make_proj_kernel(n_streams):
    def kernel(*refs):
        xs = refs[:n_streams]
        wfs = refs[n_streams:2 * n_streams]
        wbs = refs[2 * n_streams:3 * n_streams]
        bf_ref = refs[3 * n_streams]
        bb_ref = refs[3 * n_streams + 1]
        outf_ref = refs[3 * n_streams + 2]
        outb_ref = refs[3 * n_streams + 3]
        tcp, bsz, _ = xs[0].shape
        g = outf_ref.shape[-1]
        accf = jnp.zeros((tcp * bsz, g), jnp.float32)
        accb = jnp.zeros((tcp * bsz, g), jnp.float32)
        for x_ref, wf_ref, wb_ref in zip(xs, wfs, wbs):
            d = x_ref.shape[-1]
            xm = x_ref[...].reshape(tcp * bsz, d)       # bf16, read once
            accf = accf + jnp.dot(xm, wf_ref[...],
                                  preferred_element_type=jnp.float32)
            accb = accb + jnp.dot(xm, wb_ref[...],
                                  preferred_element_type=jnp.float32)
        accf = accf + bf_ref[...]
        accb = accb + bb_ref[...]
        outf_ref[...] = accf.reshape(tcp, bsz, g).astype(outf_ref.dtype)
        outb_ref[...] = accb.reshape(tcp, bsz, g).astype(outb_ref.dtype)
    return kernel


def lstm_input_projection_fused(xs, wfTs, wbTs, bf, bb, *, time_chunk):
    """xs: list of (Tp, Bp, D_s) bf16 streams -> (gxf, gxb), each (Tp,Bp,4Hp) bf16."""
    Tp, Bp, _ = xs[0].shape
    G = int(wfTs[0].shape[1])
    tcp = _pick_chunk(Tp, time_chunk)
    in_specs = (
        [pl.BlockSpec((tcp, Bp, int(x.shape[2])), lambda c: (c, 0, 0))
         for x in xs]
        + [pl.BlockSpec((int(w.shape[0]), G), lambda c: (0, 0)) for w in wfTs]
        + [pl.BlockSpec((int(w.shape[0]), G), lambda c: (0, 0)) for w in wbTs]
        + [pl.BlockSpec((1, G), lambda c: (0, 0))] * 2
    )
    out_sds = jax.ShapeDtypeStruct((Tp, Bp, G), jnp.bfloat16)
    return pl.pallas_call(
        _make_proj_kernel(len(xs)),
        out_shape=(out_sds, out_sds),
        grid_spec=pltpu.PrefetchScalarGridSpec(
            num_scalar_prefetch=0,
            grid=(Tp // tcp,),
            in_specs=in_specs,
            out_specs=(pl.BlockSpec((tcp, Bp, G), lambda c: (c, 0, 0)),
                       pl.BlockSpec((tcp, Bp, G), lambda c: (c, 0, 0))),
        ),
        compiler_params=pltpu.CompilerParams(
            dimension_semantics=("parallel",),
            vmem_limit_bytes=_VMEM_LIMIT),
    )(*xs, *wfTs, *wbTs, bf, bb)


# ----------------------------------------------------------------------------
# Kernel 2: fused bidirectional LSTM recurrence over time chunks.
#   Grid = (batch_tiles [parallel], time_chunks [arbitrary]).
#   Forward walks chunk c, backward walks chunk nc-1-c; h/c carries in VMEM.
# ----------------------------------------------------------------------------
def _make_bilstm_kernel(tc, nc, t_real, t_padded):
    pad = (t_padded != t_real)

    def kernel(gxf_ref, gxb_ref, whhf_ref, whhb_ref, of_ref, ob_ref,
               hf_s, cf_s, hb_s, cb_s):
        ct = pl.program_id(1)

        @pl.when(ct == 0)
        def _():
            hf_s[...] = jnp.zeros_like(hf_s)
            cf_s[...] = jnp.zeros_like(cf_s)
            hb_s[...] = jnp.zeros_like(hb_s)
            cb_s[...] = jnp.zeros_like(cb_s)

        H = hf_s.shape[-1]                  # padded hidden: lane-aligned slices
        whhf = whhf_ref[...]                # bf16 (Hp, 4Hp)
        whhb = whhb_ref[...]

        def cell(gx_bf, h, c_st, whhT):
            # bf16 operands on the MXU, f32 accumulation + f32 elementwise.
            gates = (gx_bf.astype(jnp.float32)
                     + jnp.dot(h.astype(jnp.bfloat16), whhT,
                               preferred_element_type=jnp.float32))
            i = jax.nn.sigmoid(gates[:, 0 * H:1 * H])
            f = jax.nn.sigmoid(gates[:, 1 * H:2 * H])
            g = jnp.tanh(gates[:, 2 * H:3 * H])
            o = jax.nn.sigmoid(gates[:, 3 * H:4 * H])
            c_new = f * c_st + i * g
            h_new = o * jnp.tanh(c_new)
            return h_new, c_new

        hf, cf = hf_s[...], cf_s[...]
        hb, cb = hb_s[...], cb_s[...]
        # TODO(synk): hold whhf/whhb resident in MXU weight registers via
        # pltpu.matmul_push_rhs/acc_lhs/pop instead of re-pushing per step.
        for t in range(tc):                 # statically unrolled chunk loop
            hf, cf = cell(gxf_ref[t], hf, cf, whhf)
            of_ref[t] = hf.astype(of_ref.dtype)
            tb = tc - 1 - t                 # backward walks its chunk reversed
            hb_new, cb_new = cell(gxb_ref[tb], hb, cb, whhb)
            if pad:                         # mask padded tail (identity cell)
                gt = (nc - 1 - ct) * tc + tb
                valid = gt < t_real
                hb = jnp.where(valid, hb_new, hb)
                cb = jnp.where(valid, cb_new, cb)
            else:
                hb, cb = hb_new, cb_new
            ob_ref[tb] = hb.astype(ob_ref.dtype)
        hf_s[...] = hf
        cf_s[...] = cf
        hb_s[...] = hb
        cb_s[...] = cb

    return kernel


def bilstm_recurrence(gxf, gxb, whhfT, whhbT, Hp, t_real, *, time_chunk,
                      batch_tile):
    """gxf/gxb: (Tp, Bp, 4Hp) bf16 pre-projected gates -> (hf, hb) bf16."""
    Tp, Bp, G = gxf.shape
    tc = time_chunk
    nc = Tp // tc
    tbb = batch_tile
    nb = Bp // tbb
    return pl.pallas_call(
        _make_bilstm_kernel(tc, nc, t_real, Tp),
        out_shape=(jax.ShapeDtypeStruct((Tp, Bp, Hp), jnp.bfloat16),
                   jax.ShapeDtypeStruct((Tp, Bp, Hp), jnp.bfloat16)),
        grid_spec=pltpu.PrefetchScalarGridSpec(
            num_scalar_prefetch=0,
            grid=(nb, nc),
            in_specs=[pl.BlockSpec((tc, tbb, G), lambda b, c: (c, b, 0)),
                      pl.BlockSpec((tc, tbb, G), lambda b, c: (nc - 1 - c, b, 0)),
                      pl.BlockSpec((Hp, G), lambda b, c: (0, 0)),
                      pl.BlockSpec((Hp, G), lambda b, c: (0, 0))],
            out_specs=(pl.BlockSpec((tc, tbb, Hp), lambda b, c: (c, b, 0)),
                       pl.BlockSpec((tc, tbb, Hp),
                                    lambda b, c: (nc - 1 - c, b, 0))),
            scratch_shapes=[pltpu.VMEM((tbb, Hp), jnp.float32)] * 4,
        ),
        compiler_params=pltpu.CompilerParams(
            dimension_semantics=("parallel", "arbitrary"),
            vmem_limit_bytes=_VMEM_LIMIT),
    )(gxf, gxb, whhfT, whhbT)


# ----------------------------------------------------------------------------
# Kernel 3: attention pooling (online softmax over time tiles) + fc1/ReLU +
#           fc2/sigmoid head.  Grid = (batch_tiles [parallel], time_tiles
#           [arbitrary]); running max/sum/ctx live in VMEM scratch, so the
#           VMEM footprint is independent of T.
# ----------------------------------------------------------------------------
def _make_head_kernel(t_real, t_padded):
    pad = (t_padded != t_real)

    def kernel(hf_ref, hb_ref, waf_ref, wab_ref, ba_ref,
               w1f_ref, w1b_ref, b1_ref, w2_ref, b2_ref, out_ref,
               m_s, l_s, cf_s, cb_s):
        k = pl.program_id(1)

        @pl.when(k == 0)
        def _():
            m_s[...] = jnp.full(m_s.shape, -jnp.inf, dtype=jnp.float32)
            l_s[...] = jnp.zeros_like(l_s)
            cf_s[...] = jnp.zeros_like(cf_s)
            cb_s[...] = jnp.zeros_like(cb_s)

        ttc, tb, Hp = hf_ref.shape
        hf_bf = hf_ref[...]
        hb_bf = hb_ref[...]
        # attention scores: MXU contraction over the feature axis (bf16 in)
        s = (jnp.dot(hf_bf.reshape(ttc * tb, Hp), waf_ref[...],
                     preferred_element_type=jnp.float32)
             + jnp.dot(hb_bf.reshape(ttc * tb, Hp), wab_ref[...],
                       preferred_element_type=jnp.float32))
        scores = s.reshape(ttc, tb, 1) + ba_ref[0, 0]           # (ttc, tb, 1)
        if pad:                                                  # mask padded t
            tidx = k * ttc + jax.lax.broadcasted_iota(jnp.int32,
                                                      (ttc, tb, 1), 0)
            scores = jnp.where(tidx < t_real, scores, -1e30)
        # online softmax over time (leading axis)
        m_prev = m_s[...]
        m_new = jnp.maximum(m_prev, jnp.max(scores, axis=0, keepdims=True))
        alpha = jnp.exp(m_prev - m_new)                          # (1, tb, 1)
        p = jnp.exp(scores - m_new)                              # (ttc, tb, 1)
        l_s[...] = alpha * l_s[...] + jnp.sum(p, axis=0, keepdims=True)
        a_col = alpha[0]                                         # (tb, 1)
        hf_f = hf_bf.astype(jnp.float32)
        hb_f = hb_bf.astype(jnp.float32)
        cf_s[...] = a_col * cf_s[...] + jnp.sum(p * hf_f, axis=0)
        cb_s[...] = a_col * cb_s[...] + jnp.sum(p * hb_f, axis=0)
        m_s[...] = m_new

        @pl.when(k == pl.num_programs(1) - 1)
        def _():
            inv_l = 1.0 / l_s[0]                                 # (tb, 1)
            ctx_f = (cf_s[...] * inv_l).astype(jnp.bfloat16)
            ctx_b = (cb_s[...] * inv_l).astype(jnp.bfloat16)
            h1 = jnp.maximum(
                jnp.dot(ctx_f, w1f_ref[...],
                        preferred_element_type=jnp.float32)
                + jnp.dot(ctx_b, w1b_ref[...],
                          preferred_element_type=jnp.float32)
                + b1_ref[...], 0.0)
            logit = (jnp.dot(h1.astype(jnp.bfloat16), w2_ref[...],
                             preferred_element_type=jnp.float32)
                     + b2_ref[...])
            out_ref[...] = jax.nn.sigmoid(logit)

    return kernel


def attention_head(hf, hb, head_ws, t_real, *, time_chunk, batch_tile):
    Th, Bp, Hp = hf.shape
    tt, tb = time_chunk, batch_tile
    nt, nb = Th // tt, Bp // tb
    waf, wab, ba, w1fT, w1bT, b1, w2T, b2 = head_ws
    seq_spec = pl.BlockSpec((tt, tb, Hp), lambda i, k: (k, i, 0))
    c2 = lambda shape: pl.BlockSpec(shape, lambda i, k: (0, 0))
    return pl.pallas_call(
        _make_head_kernel(t_real, Th),
        out_shape=jax.ShapeDtypeStruct((Bp, 1), jnp.float32),
        grid_spec=pltpu.PrefetchScalarGridSpec(
            num_scalar_prefetch=0,
            grid=(nb, nt),
            in_specs=[seq_spec, seq_spec,
                      c2((Hp, 1)), c2((Hp, 1)), c2((1, 1)),
                      c2((Hp, Hp)), c2((Hp, Hp)), c2((1, Hp)),
                      c2((Hp, 1)), c2((1, 1))],
            out_specs=pl.BlockSpec((tb, 1), lambda i, k: (i, 0)),
            scratch_shapes=[pltpu.VMEM((1, tb, 1), jnp.float32),
                            pltpu.VMEM((1, tb, 1), jnp.float32),
                            pltpu.VMEM((tb, Hp), jnp.float32),
                            pltpu.VMEM((tb, Hp), jnp.float32)],
        ),
        compiler_params=pltpu.CompilerParams(
            dimension_semantics=("parallel", "arbitrary"),
            vmem_limit_bytes=_VMEM_LIMIT),
    )(hf, hb, waf, wab, ba, w1fT, w1bT, b1, w2T, b2)


# ----------------------------------------------------------------------------
# Parameter preparation: zero-pad to hardware tiles (gate blocks i,f,g,o each
# padded H -> Hp so gate slices are lane-aligned; padded units stay exactly 0),
# cast matmul operands to bf16 (biases stay f32).
# ----------------------------------------------------------------------------
def _pad_gate_rows(w, H, Hp):
    """(4H, D) -> (4Hp, D), zero-padding each PyTorch gate block (i, f, g, o)."""
    d = w.shape[1]
    w4 = w.reshape(4, H, d)
    w4 = jnp.pad(w4, ((0, 0), (0, Hp - H), (0, 0)))
    return w4.reshape(4 * Hp, d)


def _prep_direction(p, H, Hp, first_layer, E, Ep):
    wih = _pad_gate_rows(p["wih"], H, Hp)                        # (4Hp, Din)
    whh = _pad_gate_rows(p["whh"], H, Hp)                        # (4Hp, H)
    whhT = jnp.pad(whh, ((0, 0), (0, Hp - H))).T.astype(jnp.bfloat16)
    b = (p["bih"] + p["bhh"]).reshape(4, H)
    b = jnp.pad(b, ((0, 0), (0, Hp - H))).reshape(1, 4 * Hp)     # f32
    if first_layer:
        wihTs = [jnp.pad(wih, ((0, 0), (0, Ep - E))).T.astype(jnp.bfloat16)]
    else:
        wf = jnp.pad(wih[:, :H], ((0, 0), (0, Hp - H))).T.astype(jnp.bfloat16)
        wb = jnp.pad(wih[:, H:], ((0, 0), (0, Hp - H))).T.astype(jnp.bfloat16)
        wihTs = [wf, wb]
    return wihTs, whhT, b


def _prep_head(params, H, Hp):
    wa = params["wa"]                                            # (1, 2H)
    waf = jnp.pad(wa[0, :H], (0, Hp - H)).reshape(Hp, 1).astype(jnp.bfloat16)
    wab = jnp.pad(wa[0, H:], (0, Hp - H)).reshape(Hp, 1).astype(jnp.bfloat16)
    ba = params["ba"].reshape(1, 1)
    w1 = params["w1"]                                            # (H, 2H)
    w1fT = jnp.pad(w1[:, :H].T, ((0, Hp - H), (0, Hp - H))).astype(jnp.bfloat16)
    w1bT = jnp.pad(w1[:, H:].T, ((0, Hp - H), (0, Hp - H))).astype(jnp.bfloat16)
    b1 = jnp.pad(params["b1"], (0, Hp - H)).reshape(1, Hp)
    w2T = jnp.pad(params["w2"].T, ((0, Hp - H), (0, 0))).astype(jnp.bfloat16)
    b2 = params["b2"].reshape(1, 1)
    return waf, wab, ba, w1fT, w1bT, b1, w2T, b2


# ----------------------------------------------------------------------------
# Full forward (Pallas path).
# ----------------------------------------------------------------------------
def forward(params, token_ids, hidden, num_layers, *,
            rec_chunk_cap=None, proj_chunk_cap=None,
            head_time_cap=None, head_batch_cap=128, rec_batch_cap=256):
    B, T = token_ids.shape
    H = hidden
    Hp = _round_up(H, 128)
    Bp = _round_up(B, 8)
    G = 4 * Hp
    E = params["emb"].shape[1]
    Ep = _round_up(E, 128)

    # VMEM-budget-derived tile sizes (bf16 blocks, double-buffered).
    tbb = _pick_batch_tile(Bp, rec_batch_cap)
    if rec_chunk_cap is None:
        rec_chunk_cap = _cap_from_budget(2 * tbb * (2 * G + 2 * Hp) * 2,
                                         _VMEM_BUDGET, 4, 16)
    rec_tc, Tp = _chunk_and_pad(T, rec_chunk_cap)
    if proj_chunk_cap is None:
        d_tot = max(Ep, 2 * Hp)
        proj_chunk_cap = _cap_from_budget(2 * Bp * (d_tot + 2 * G) * 2,
                                          _VMEM_BUDGET, 8, 128)
    proj_tc = _pick_chunk(Tp, proj_chunk_cap)

    # Embedding gather (XLA glue), directly TIME-MAJOR and bf16, zero-padded to
    # the hardware tiles; no full-activation transposes anywhere downstream.
    emb_tab = jnp.pad(params["emb"], ((0, 0), (0, Ep - E))).astype(jnp.bfloat16)
    x = jnp.take(emb_tab, token_ids.T, axis=0)                   # (T, B, Ep)
    x = jnp.pad(x, ((0, Tp - T), (0, Bp - B), (0, 0)))           # (Tp, Bp, Ep)
    # TODO(synk): dropout layers are identity (inference / eval-mode forward).

    streams = [x]
    for l in range(num_layers):
        layer = params["lstm"][l]
        first = (l == 0)
        wfTs, whhfT, bf = _prep_direction(layer["fwd"], H, Hp, first, E, Ep)
        wbTs, whhbT, bb = _prep_direction(layer["bwd"], H, Hp, first, E, Ep)
        # fused fwd+bwd hoisted input projection: streams read from HBM once
        gxf, gxb = lstm_input_projection_fused(streams, wfTs, wbTs, bf, bb,
                                               time_chunk=proj_tc)
        # fused fwd/bwd recurrence; outputs stay as two bf16 streams (no concat)
        hf, hb = bilstm_recurrence(gxf, gxb, whhfT, whhbT, Hp, T,
                                   time_chunk=rec_tc, batch_tile=tbb)
        streams = [hf, hb]

    # head: real time steps only; re-pad to the head's own time tiling
    hf, hb = streams[0][:T], streams[1][:T]
    tb = _pick_batch_tile(Bp, head_batch_cap)
    if head_time_cap is None:
        head_time_cap = _cap_from_budget(2 * 2 * tb * Hp * 2,
                                         _VMEM_BUDGET, 8, 512)
    tt, Th = _chunk_and_pad(T, head_time_cap)
    if Th != T:
        hf = jnp.pad(hf, ((0, Th - T), (0, 0), (0, 0)))
        hb = jnp.pad(hb, ((0, Th - T), (0, 0), (0, 0)))
    head_ws = _prep_head(params, H, Hp)
    out = attention_head(hf, hb, head_ws, T, time_chunk=tt, batch_tile=tb)
    return out[:B]


# ----------------------------------------------------------------------------
# Pure-JAX reference (for correctness check).
# ----------------------------------------------------------------------------
def _ref_lstm_dir(x_tbe, wih, whh, bih, bhh, reverse):
    T, B, Din = x_tbe.shape
    H = whh.shape[1]
    xs = x_tbe[::-1] if reverse else x_tbe

    def step(carry, xt):
        h, c = carry
        gates = xt @ wih.T + h @ whh.T + bih + bhh
        i = jax.nn.sigmoid(gates[:, :H])
        f = jax.nn.sigmoid(gates[:, H:2 * H])
        g = jnp.tanh(gates[:, 2 * H:3 * H])
        o = jax.nn.sigmoid(gates[:, 3 * H:4 * H])
        c_new = f * c + i * g
        h_new = o * jnp.tanh(c_new)
        return (h_new, c_new), h_new

    init = (jnp.zeros((B, H), jnp.float32), jnp.zeros((B, H), jnp.float32))
    _, hs = jax.lax.scan(step, init, xs)
    return hs[::-1] if reverse else hs


def ref_forward(params, token_ids, hidden, num_layers):
    emb = jnp.take(params["emb"], token_ids, axis=0)
    x = jnp.transpose(emb, (1, 0, 2))
    for l in range(num_layers):
        p = params["lstm"][l]
        hf = _ref_lstm_dir(x, p["fwd"]["wih"], p["fwd"]["whh"],
                           p["fwd"]["bih"], p["fwd"]["bhh"], False)
        hb = _ref_lstm_dir(x, p["bwd"]["wih"], p["bwd"]["whh"],
                           p["bwd"]["bih"], p["bwd"]["bhh"], True)
        x = jnp.concatenate([hf, hb], axis=-1)
    lstm_out = jnp.transpose(x, (1, 0, 2))                       # (B, T, 2H)
    scores = jnp.einsum("btd,d->bt", lstm_out, params["wa"][0]) + params["ba"][0]
    attn = jax.nn.softmax(scores, axis=1)
    context = jnp.einsum("bt,btd->bd", attn, lstm_out)
    h1 = jnp.maximum(context @ params["w1"].T + params["b1"], 0.0)
    return jax.nn.sigmoid(h1 @ params["w2"].T + params["b2"])


# ----------------------------------------------------------------------------
# Deterministic parameter init (shapes mirror the PyTorch module).
# ----------------------------------------------------------------------------
def init_params(key, vocab_size, embed_dim, hidden_dim, num_layers):
    keys = iter(jax.random.split(key, 8 + 8 * num_layers))

    def nrm(shape):
        return jax.random.normal(next(keys), shape, jnp.float32) * 0.1

    emb = nrm((vocab_size, embed_dim)).at[1].set(0.0)   # padding_idx=1 row zero
    params = {"emb": emb, "lstm": []}
    for l in range(num_layers):
        din = embed_dim if l == 0 else 2 * hidden_dim
        layer = {}
        for d in ("fwd", "bwd"):
            layer[d] = dict(
                wih=nrm((4 * hidden_dim, din)),
                whh=nrm((4 * hidden_dim, hidden_dim)),
                bih=nrm((4 * hidden_dim,)),
                bhh=nrm((4 * hidden_dim,)),
            )
        params["lstm"].append(layer)
    params["wa"] = nrm((1, 2 * hidden_dim))             # attention: Linear(2H, 1)
    params["ba"] = nrm((1,))
    params["w1"] = nrm((hidden_dim, 2 * hidden_dim))    # fc1: Linear(2H, H)
    params["b1"] = nrm((hidden_dim,))
    params["w2"] = nrm((1, hidden_dim))                 # fc2: Linear(H, 1)
    params["b2"] = nrm((1,))
    return params


if __name__ == "__main__":
    vocab_size, embed_dim, hidden_dim, num_layers = 50, 16, 32, 2

    key = jax.random.PRNGKey(0)
    kp, kx1, kx2 = jax.random.split(key, 3)
    params = init_params(kp, vocab_size, embed_dim, hidden_dim, num_layers)

    # bf16 matmul operands / bf16 intermediate storage -> loosened tolerance
    rtol, atol = 2e-2, 1e-2

    # Check 1: divisible T (no time padding exercised).
    batch, seq = 2, 8
    token_ids = jax.random.randint(kx1, (batch, seq), 0, vocab_size)
    out = jax.block_until_ready(forward(params, token_ids, hidden_dim,
                                        num_layers))
    ref = ref_forward(params, token_ids, hidden_dim, num_layers)
    assert out.shape == (batch, 1)
    assert bool(jnp.allclose(out, ref, rtol=rtol, atol=atol)), (out, ref)

    # Check 2: awkward T / batch -> exercises time padding + backward masking
    # and the online-softmax head time tiling.
    batch2, seq2 = 3, 10
    token_ids2 = jax.random.randint(kx2, (batch2, seq2), 0, vocab_size)
    out2 = jax.block_until_ready(forward(params, token_ids2, hidden_dim,
                                         num_layers,
                                         rec_chunk_cap=4, head_time_cap=4))
    ref2 = ref_forward(params, token_ids2, hidden_dim, num_layers)
    assert out2.shape == (batch2, 1)
    assert bool(jnp.allclose(out2, ref2, rtol=rtol, atol=atol)), (out2, ref2)

    print("KERNEL_OK")
</pallas_src>

<mosaic_0001>
module attributes {stable_mosaic.version = 11 : i64} {
  func.func @kernel(%arg0: i32, %arg1: memref<8x8x128xbf16, #tpu.memory_space<vmem>>, %arg2: memref<128x512xbf16, #tpu.memory_space<vmem>>, %arg3: memref<128x512xbf16, #tpu.memory_space<vmem>>, %arg4: memref<1x512xf32, #tpu.memory_space<vmem>>, %arg5: memref<1x512xf32, #tpu.memory_space<vmem>>, %arg6: memref<8x8x512xbf16, #tpu.memory_space<vmem>>, %arg7: memref<8x8x512xbf16, #tpu.memory_space<vmem>>) attributes {dimension_semantics = [#tpu.dimension_semantics<parallel>], iteration_bounds = array<i64: 1>, scalar_prefetch = 0 : i64, scratch_operands = 0 : i64, tpu.core_type = #tpu.core_type<tc>, window_params = [{transform_indices = @transform_0, window_bounds = array<i64: 8, 8, 128>}, {pipeline_mode = #tpu.pipeline_mode<synchronous>, transform_indices = @transform_1, window_bounds = array<i64: 128, 512>}, {pipeline_mode = #tpu.pipeline_mode<synchronous>, transform_indices = @transform_2, window_bounds = array<i64: 128, 512>}, {pipeline_mode = #tpu.pipeline_mode<synchronous>, transform_indices = @transform_3, window_bounds = array<i64: 1, 512>}, {pipeline_mode = #tpu.pipeline_mode<synchronous>, transform_indices = @transform_4, window_bounds = array<i64: 1, 512>}, {transform_indices = @transform_5, window_bounds = array<i64: 8, 8, 512>}, {transform_indices = @transform_6, window_bounds = array<i64: 8, 8, 512>}]} {
    %cst = arith.constant 0.000000e+00 : f32
    %0 = vector.broadcast %cst : f32 to vector<64x512xf32>
    %cst_0 = arith.constant 0.000000e+00 : f32
    %1 = vector.broadcast %cst_0 : f32 to vector<64x512xf32>
    %c0 = arith.constant 0 : index
    %c0_1 = arith.constant 0 : index
    %c0_2 = arith.constant 0 : index
    %2 = vector.load %arg1[%c0, %c0_1, %c0_2] : memref<8x8x128xbf16, #tpu.memory_space<vmem>>, vector<8x8x128xbf16>
    %3 = vector.shape_cast %2 : vector<8x8x128xbf16> to vector<64x128xbf16>
    %c0_3 = arith.constant 0 : index
    %c0_4 = arith.constant 0 : index
    %4 = vector.load %arg2[%c0_3, %c0_4] : memref<128x512xbf16, #tpu.memory_space<vmem>>, vector<128x512xbf16>
    %cst_5 = arith.constant dense<0.000000e+00> : vector<64x512xf32>
    %5 = tpu.matmul %3, %4, %cst_5 {dimension_numbers = #tpu.dot_dimension_numbers<[1], [0], [0], [1], [0, 0, 1, 1], [], []>} : vector<64x128xbf16>, vector<128x512xbf16>, vector<64x512xf32> -> vector<64x512xf32>
    %6 = arith.addf %0, %5 : vector<64x512xf32>
    %c0_6 = arith.constant 0 : index
    %c0_7 = arith.constant 0 : index
    %7 = vector.load %arg3[%c0_6, %c0_7] : memref<128x512xbf16, #tpu.memory_space<vmem>>, vector<128x512xbf16>
    %cst_8 = arith.constant dense<0.000000e+00> : vector<64x512xf32>
    %8 = tpu.matmul %3, %7, %cst_8 {dimension_numbers = #tpu.dot_dimension_numbers<[1], [0], [0], [1], [0, 0, 1, 1], [], []>} : vector<64x128xbf16>, vector<128x512xbf16>, vector<64x512xf32> -> vector<64x512xf32>
    %9 = arith.addf %1, %8 : vector<64x512xf32>
    %c0_9 = arith.constant 0 : index
    %c0_10 = arith.constant 0 : index
    %10 = vector.load %arg4[%c0_9, %c0_10] : memref<1x512xf32, #tpu.memory_space<vmem>>, vector<1x512xf32>
    %11 = vector.broadcast %10 : vector<1x512xf32> to vector<64x512xf32>
    %12 = arith.addf %6, %11 : vector<64x512xf32>
    %c0_11 = arith.constant 0 : index
    %c0_12 = arith.constant 0 : index
    %13 = vector.load %arg5[%c0_11, %c0_12] : memref<1x512xf32, #tpu.memory_space<vmem>>, vector<1x512xf32>
    %14 = vector.broadcast %13 : vector<1x512xf32> to vector<64x512xf32>
    %15 = arith.addf %9, %14 : vector<64x512xf32>
    %16 = vector.shape_cast %12 : vector<64x512xf32> to vector<8x8x512xf32>
    %17 = arith.truncf %16 : vector<8x8x512xf32> to vector<8x8x512xbf16>
    %c0_13 = arith.constant 0 : index
    %c0_14 = arith.constant 0 : index
    %c0_15 = arith.constant 0 : index
    %18 = vector.load %arg6[%c0_13, %c0_14, %c0_15] : memref<8x8x512xbf16, #tpu.memory_space<vmem>>, vector<8x8x512xbf16>
    tpu.vector_store %arg6[%c0_13, %c0_14, %c0_15], %17 {strides = array<i32>} : memref<8x8x512xbf16, #tpu.memory_space<vmem>>, vector<8x8x512xbf16>,
    %19 = vector.shape_cast %15 : vector<64x512xf32> to vector<8x8x512xf32>
    %20 = arith.truncf %19 : vector<8x8x512xf32> to vector<8x8x512xbf16>
    %c0_16 = arith.constant 0 : index
    %c0_17 = arith.constant 0 : index
    %c0_18 = arith.constant 0 : index
    %21 = vector.load %arg7[%c0_16, %c0_17, %c0_18] : memref<8x8x512xbf16, #tpu.memory_space<vmem>>, vector<8x8x512xbf16>
    tpu.vector_store %arg7[%c0_16, %c0_17, %c0_18], %20 {strides = array<i32>} : memref<8x8x512xbf16, #tpu.memory_space<vmem>>, vector<8x8x512xbf16>,
    return
  }
  func.func @transform_0(%arg0: i32) -> (i32, i32, i32) {
    %c0_i32 = arith.constant 0 : i32
    %c0_i32_0 = arith.constant 0 : i32
    %c0_i32_1 = arith.constant 0 : i32
    return %arg0, %c0_i32, %c0_i32_0 : i32, i32, i32
  }
  func.func @transform_1(%arg0: i32) -> (i32, i32) {
    %c0_i32 = arith.constant 0 : i32
    %c0_i32_0 = arith.constant 0 : i32
    %c0_i32_1 = arith.constant 0 : i32
    return %c0_i32, %c0_i32_0 : i32, i32
  }
  func.func @transform_2(%arg0: i32) -> (i32, i32) {
    %c0_i32 = arith.constant 0 : i32
    %c0_i32_0 = arith.constant 0 : i32
    %c0_i32_1 = arith.constant 0 : i32
    return %c0_i32, %c0_i32_0 : i32, i32
  }
  func.func @transform_3(%arg0: i32) -> (i32, i32) {
    %c0_i32 = arith.constant 0 : i32
    %c0_i32_0 = arith.constant 0 : i32
    %c0_i32_1 = arith.constant 0 : i32
    return %c0_i32, %c0_i32_0 : i32, i32
  }
  func.func @transform_4(%arg0: i32) -> (i32, i32) {
    %c0_i32 = arith.constant 0 : i32
    %c0_i32_0 = arith.constant 0 : i32
    %c0_i32_1 = arith.constant 0 : i32
    return %c0_i32, %c0_i32_0 : i32, i32
  }
  func.func @transform_5(%arg0: i32) -> (i32, i32, i32) {
    %c0_i32 = arith.constant 0 : i32
    %c0_i32_0 = arith.constant 0 : i32
    %c0_i32_1 = arith.constant 0 : i32
    return %arg0, %c0_i32, %c0_i32_0 : i32, i32, i32
  }
  func.func @transform_6(%arg0: i32) -> (i32, i32, i32) {
    %c0_i32 = arith.constant 0 : i32
    %c0_i32_0 = arith.constant 0 : i32
    %c0_i32_1 = arith.constant 0 : i32
    return %arg0, %c0_i32, %c0_i32_0 : i32, i32, i32
  }
}

</mosaic_0001>

<bundles_post_ra>
// kernel: tpu_custom_call.1
= control target key start
LH: loop header
LB: loop body
LE: loop exit
PB: predicated region body
PF: predicated region fallthrough
CT: control target
= control target key end

     0   :  { %12 = vsyncpa [#allocation3], 0  ;;  %s1845_s0 = inlined_call_operand.hbm [shape: bf16[8,8,128], index: 0, kind: input, shape index: {}]   ;;  %s1846_s1 = inlined_call_operand.hbm [shape: bf16[128,512], index: 1, kind: input, shape index: {}]   ;;  %s1847_s2 = inlined_call_operand.hbm [shape: bf16[128,512], index: 2, kind: input, shape index: {}]   ;;  %s1848_s3 = inlined_call_operand.hbm [shape: f32[1,512], index: 3, kind: input, shape index: {}]   ;;  %s1849_s4 = inlined_call_operand.hbm [shape: f32[1,512], index: 4, kind: input, shape index: {}]   ;;  %s1850_s5 = inlined_call_operand.hbm [shape: bf16[8,8,512], index: 5, kind: output, shape index: {0}]   ;;  %s1851_s6 = inlined_call_operand.hbm [shape: bf16[8,8,512], index: 6, kind: output, shape index: {1}]  }
   0x1   :  { %13 = vsyncpa [#allocation6], 0 }
   0x2   :  { %14 = vsyncpa [#allocation9], 0 }
   0x3   :  { %15 = vsyncpa [#allocation4], 0 }
   0x4   :  { %16 = vsyncpa [#allocation13], 0  ;;  %s1572_s21 = smov [#allocation5]   ;;  %s1408_s25 = scalar_lea.hbm %s1846_s1, 4096 }
   0x5   :  { %s34_s22 = sshll.u32 %s1572_s21, 4  ;;  %p1409_p0 = scmp.ne.s32.totalorder %s1846_s1, %s1408_s25  ;;  %s35_s22 = int_to_ptr.vmem [resolvable:$true] %s34_s22 }
   0x6   :  { %p1412_p1 = scmp.lt.u32.totalorder %s1408_s25, %s1846_s1 }
   0x8   :  { %p1414_p2 = pnand %p1412_p1, %p1409_p0 }
   0xa   :  { %1417 = shalt.err (!%p1414_p2)
}
   0xb   :  { %s1418_s30 = scalar_lea.vmem %s35_s22, 4096  ;;  %p1423_p4 = scmp.lt.s32.totalorder %s35_s22, %s35_s22 }
   0xc   :  { %p1419_p3 = scmp.ne.s32.totalorder %s35_s22, %s1418_s30  ;;  %p1424_p5 = scmp.lt.s32.totalorder %s1418_s30, %s1418_s30 }
   0xe   :  { %p1425_p6 = por %p1424_p5, %p1423_p4 }
  0x10   :  { %p1426_p7 = pnand %p1425_p6, %p1419_p3 }
  0x12   :  { %1429 = shalt.err (!%p1426_p7)
}
  0x13   :  { %s1573_s7 = smov 256   ;;  %s1574_s8 = smov 16  }
  0x14   :  { %40 = dma.hbm_to_vmem [thread:$0]  %s1846_s1, 4096, %s35_s22, [#allocation6], %s1573_s7, %s1573_s7, %s1574_s8  }
  0x15   :  { %s1575_s11 = smov [#allocation8]   ;;  %s1576_s13 = smov [#allocation2]  }
  0x16   :  { %s59_s12 = sshll.u32 %s1575_s11, 4  ;;  %s22_s14 = sshll.u32 %s1576_s13, 4  ;;  %s60_s12 = int_to_ptr.vmem [resolvable:$true] %s59_s12  ;;  %s23_s14 = int_to_ptr.vmem [resolvable:$true] %s22_s14 }
  0x17   :  { %s1430_s17 = scalar_lea.hbm %s1848_s3, 64 }
  0x18   :  { %p1431_p8 = scmp.ne.s32.totalorder %s1848_s3, %s1430_s17  ;;  %p1434_p9 = scmp.lt.u32.totalorder %s1430_s17, %s1848_s3 }
  0x1a   :  { %p1436_p10 = pnand %p1434_p9, %p1431_p8 }
  0x1c   :  { %1439 = shalt.err (!%p1436_p10)
}
  0x1d   :  { %s1440_s1 = scalar_lea.vmem %s60_s12, 64  ;;  %p1445_p12 = scmp.lt.s32.totalorder %s60_s12, %s60_s12 }
  0x1e   :  { %p1441_p11 = scmp.ne.s32.totalorder %s60_s12, %s1440_s1  ;;  %p1446_p13 = scmp.lt.s32.totalorder %s1440_s1, %s1440_s1 }
  0x20   :  { %p1447_p0 = por %p1446_p13, %p1445_p12 }
  0x22   :  { %p1448_p1 = pnand %p1447_p0, %p1441_p11 }
  0x24   :  { %1451 = shalt.err (!%p1448_p1)
}
  0x25   :  { %62 = dma.hbm_to_vmem [thread:$0]  %s1848_s3, 64, %s60_s12, [#allocation9]  }
  0x26   :  { %s1452_s26 = scalar_lea.hbm %s1845_s0, 512 }
  0x27   :  { %p1453_p2 = scmp.ne.s32.totalorder %s1845_s0, %s1452_s26  ;;  %p1456_p3 = scmp.lt.u32.totalorder %s1452_s26, %s1845_s0 }
  0x29   :  { %p1458_p4 = pnand %p1456_p3, %p1453_p2 }
  0x2b   :  { %1461 = shalt.err (!%p1458_p4)
}
  0x2c   :  { %s1462_s9 = scalar_lea.vmem %s23_s14, 512  ;;  %p1467_p6 = scmp.lt.s32.totalorder %s23_s14, %s23_s14 }
  0x2d   :  { %p1463_p5 = scmp.ne.s32.totalorder %s23_s14, %s1462_s9  ;;  %p1468_p7 = scmp.lt.s32.totalorder %s1462_s9, %s1462_s9 }
  0x2f   :  { %p1469_p8 = por %p1468_p7, %p1467_p6 }
  0x31   :  { %p1470_p9 = pnand %p1469_p8, %p1463_p5 }
  0x33   :  { %1473 = shalt.err (!%p1470_p9)
}
  0x34   :  { %s1577_s3 = smov 64   ;;  %s1578_s10 = smov 4  }
  0x35   :  { %28 = dma.hbm_to_vmem [thread:$0]  %s1845_s0, 512, %s23_s14, [#allocation3], %s1577_s3, %s1577_s3, %s1578_s10  }
  0x36   :  { %s1579_s13 = smov [#allocation7]   ;;  %s1580_s16 = smov [#allocation10]  }
  0x37   :  { %s46_s15 = sshll.u32 %s1579_s13, 4  ;;  %s69_s17 = sshll.u32 %s1580_s16, 4  ;;  %s47_s15 = int_to_ptr.vmem [resolvable:$true] %s46_s15  ;;  %s70_s17 = int_to_ptr.vmem [resolvable:$true] %s69_s17 }
  0x38   :  { %s1474_s20 = scalar_lea.hbm %s1847_s2, 4096 }
  0x39   :  { %p1475_p10 = scmp.ne.s32.totalorder %s1847_s2, %s1474_s20  ;;  %p1478_p11 = scmp.lt.u32.totalorder %s1474_s20, %s1847_s2 }
  0x3b   :  { %p1480_p12 = pnand %p1478_p11, %p1475_p10 }
  0x3d   :  { %1483 = shalt.err (!%p1480_p12)
}
  0x3e   :  { %s1484_s0 = scalar_lea.vmem %s47_s15, 4096  ;;  %p1489_p0 = scmp.lt.s32.totalorder %s47_s15, %s47_s15 }
  0x3f   :  { %p1485_p13 = scmp.ne.s32.totalorder %s47_s15, %s1484_s0  ;;  %p1490_p1 = scmp.lt.s32.totalorder %s1484_s0, %s1484_s0 }
  0x41   :  { %p1491_p2 = por %p1490_p1, %p1489_p0 }
  0x43   :  { %p1492_p3 = pnand %p1491_p2, %p1485_p13 }
  0x45   :  { %1495 = shalt.err (!%p1492_p3)
}
  0x46   :  { %52 = dma.hbm_to_vmem [thread:$0]  %s1847_s2, 4096, %s47_s15, [#allocation6], %s1573_s7, %s1573_s7, %s1574_s8  }
  0x47   :  { %s1496_s27 = scalar_lea.hbm %s1849_s4, 64 }
  0x48   :  { %p1497_p4 = scmp.ne.s32.totalorder %s1849_s4, %s1496_s27  ;;  %p1500_p5 = scmp.lt.u32.totalorder %s1496_s27, %s1849_s4 }
  0x4a   :  { %p1502_p6 = pnand %p1500_p5, %p1497_p4 }
  0x4c   :  { %1505 = shalt.err (!%p1502_p6)
}
  0x4d   :  { %s1506_s3 = scalar_lea.vmem %s70_s17, 64  ;;  %p1511_p8 = scmp.lt.s32.totalorder %s70_s17, %s70_s17 }
  0x4e   :  { %p1507_p7 = scmp.ne.s32.totalorder %s70_s17, %s1506_s3  ;;  %p1512_p9 = scmp.lt.s32.totalorder %s1506_s3, %s1506_s3 }
  0x50   :  { %p1513_p10 = por %p1512_p9, %p1511_p8 }
  0x52   :  { %p1514_p11 = pnand %p1513_p10, %p1507_p7 }
  0x54   :  { %1517 = shalt.err (!%p1514_p11)
}
  0x55   :  { %72 = dma.hbm_to_vmem [thread:$0]  %s1849_s4, 64, %s70_s17, [#allocation9]  }
  0x56   :  { %1562 = dma.done.wait [#allocation3], 512  }
  0x57   :  { %1563 = vsyncadd [#allocation3], 4294966784 }
  0x58   :  { %1564 = dma.done.wait [#allocation6], 8192  }
  0x59   :  { %1565 = vsyncadd [#allocation6], 4294959104 }
  0x5a   :  { %1566 = dma.done.wait [#allocation9], 128  }
  0x5b   :  { %1567 = vsyncadd [#allocation9], 4294967168  ;;  %v1581_v0 = vmov 0   ;;  %v1308_v1 = vld [vmem:[#allocation5 + $0x4] ss:$16 sps:$4 sm:$0xff]   ;;  %v1693_v44 = vld [vmem:[#allocation2 + $0x8] sm:$0xff]  }
  0x5c   :  { %399 = vmatprep.mubr.bf16.mxu0 %v1581_v0  ;;  %472 = vmatprep.mubr.bf16.mxu1 %v1581_v0  ;;  %v1310_v2 = vld [vmem:[#allocation5 + $0xc] ss:$16 sps:$4 sm:$0xff]   ;;  %v1312_v3 = vld [vmem:[#allocation5] ss:$16 sps:$4 sm:$0xff]   ;;  %v1313_v4 = vld [vmem:[#allocation5 + $0x8] ss:$16 sps:$4 sm:$0xff]  }
  0x5d   :  { %367 = vmatprep.subr.bf16.mxu0 %v1308_v1  ;;  %440 = vmatprep.subr.bf16.mxu1 %v1310_v2  ;;  %v1314_v5 = vld [vmem:[#allocation5 + $0x24] ss:$16 sps:$4 sm:$0xff]   ;;  %v1316_v6 = vld [vmem:[#allocation5 + $0x2c] ss:$16 sps:$4 sm:$0xff]   ;;  %v1318_v7 = vld [vmem:[#allocation5 + $0x20] ss:$16 sps:$4 sm:$0xff]  }
  0x5e   :  { %368 = vmatpush1.bf16.msra.mxu0 %v1312_v3  ;;  %441 = vmatpush1.bf16.msra.mxu1 %v1313_v4  ;;  %v1319_v8 = vld [vmem:[#allocation5 + $0x28] ss:$16 sps:$4 sm:$0xff]   ;;  %v1320_v9 = vld [vmem:[#allocation5 + $0x44] ss:$16 sps:$4 sm:$0xff]   ;;  %v1322_v10 = vld [vmem:[#allocation5 + $0x4c] ss:$16 sps:$4 sm:$0xff]  }
  0x5f   :  { %369 = vmatprep.subr.bf16.mxu0 %v1314_v5  ;;  %442 = vmatprep.subr.bf16.mxu1 %v1316_v6  ;;  %v1324_v11 = vld [vmem:[#allocation5 + $0x40] ss:$16 sps:$4 sm:$0xff]   ;;  %v1325_v12 = vld [vmem:[#allocation5 + $0x48] ss:$16 sps:$4 sm:$0xff]   ;;  %v1326_v13 = vld [vmem:[#allocation5 + $0x64] ss:$16 sps:$4 sm:$0xff]   ;;  %v163_v6 = vlaneseq }
  0x60   :  { %v1328_v14 = vld [vmem:[#allocation5 + $0x6c] ss:$16 sps:$4 sm:$0xff]   ;;  %v1330_v15 = vld [vmem:[#allocation5 + $0x60] ss:$16 sps:$4 sm:$0xff]   ;;  %v1331_v16 = vld [vmem:[#allocation5 + $0x68] ss:$16 sps:$4 sm:$0xff]  }
  0x61   :  { %v1332_v17 = vld [vmem:[#allocation5 + $0x84] ss:$16 sps:$4 sm:$0xff]   ;;  %v1334_v18 = vld [vmem:[#allocation5 + $0x8c] ss:$16 sps:$4 sm:$0xff]   ;;  %v1336_v19 = vld [vmem:[#allocation5 + $0x80] ss:$16 sps:$4 sm:$0xff]  }
  0x62   :  { %370 = vmatpush1.bf16.msra.mxu0 %v1318_v7  ;;  %443 = vmatpush1.bf16.msra.mxu1 %v1319_v8  ;;  %v1337_v20 = vld [vmem:[#allocation5 + $0x88] ss:$16 sps:$4 sm:$0xff]   ;;  %v1338_v21 = vld [vmem:[#allocation5 + $0xa4] ss:$16 sps:$4 sm:$0xff]   ;;  %v1340_v22 = vld [vmem:[#allocation5 + $0xac] ss:$16 sps:$4 sm:$0xff]  }
  0x63   :  { %371 = vmatprep.subr.bf16.mxu0 %v1320_v9  ;;  %444 = vmatprep.subr.bf16.mxu1 %v1322_v10  ;;  %v1342_v23 = vld [vmem:[#allocation5 + $0xa0] ss:$16 sps:$4 sm:$0xff]   ;;  %v1343_v24 = vld [vmem:[#allocation5 + $0xa8] ss:$16 sps:$4 sm:$0xff]   ;;  %v1344_v25 = vld [vmem:[#allocation5 + $0xc4] ss:$16 sps:$4 sm:$0xff]  }
  0x64   :  { %v1346_v26 = vld [vmem:[#allocation5 + $0xcc] ss:$16 sps:$4 sm:$0xff]   ;;  %v1348_v27 = vld [vmem:[#allocation5 + $0xc0] ss:$16 sps:$4 sm:$0xff]   ;;  %v1349_v28 = vld [vmem:[#allocation5 + $0xc8] ss:$16 sps:$4 sm:$0xff]  }
  0x65   :  { %v1350_v29 = vld [vmem:[#allocation5 + $0xe4] ss:$16 sps:$4 sm:$0xff]   ;;  %v1352_v30 = vld [vmem:[#allocation5 + $0xec] ss:$16 sps:$4 sm:$0xff]   ;;  %v1354_v31 = vld [vmem:[#allocation5 + $0xe0] ss:$16 sps:$4 sm:$0xff]  }
  0x66   :  { %372 = vmatpush1.bf16.msra.mxu0 %v1324_v11  ;;  %445 = vmatpush1.bf16.msra.mxu1 %v1325_v12  ;;  %v1355_v32 = vld [vmem:[#allocation5 + $0xe8] ss:$16 sps:$4 sm:$0xff]   ;;  %v1359_v33 = vld [vmem:[#allocation7 + $0x4] ss:$16 sps:$4 sm:$0xff]   ;;  %v1362_v34 = vld [vmem:[#allocation7 + $0xc] ss:$16 sps:$4 sm:$0xff]  }
  0x67   :  { %373 = vmatprep.subr.bf16.mxu0 %v1326_v13  ;;  %446 = vmatprep.subr.bf16.mxu1 %v1328_v14  ;;  %v1687_v35 = vld [vmem:[#allocation2] sm:$0xff]   ;;  %v1360_v37 = vld [vmem:[#allocation7 + $0x8] ss:$16 sps:$4 sm:$0xff]   ;;  %v1368_v39 = vld [vmem:[#allocation7 + $0x2c] ss:$16 sps:$4 sm:$0xff]   ;;  %v1713_v7 = vshrl.u32 %v163_v6, 7 }
  0x68   :  { %v1357_v36 = vld [vmem:[#allocation7] ss:$16 sps:$4 sm:$0xff]   ;;  %v1365_v38 = vld [vmem:[#allocation7 + $0x24] ss:$16 sps:$4 sm:$0xff]   ;;  %v1366_v41 = vld [vmem:[#allocation7 + $0x28] ss:$16 sps:$4 sm:$0xff]  }
  0x69   :  { %v1363_v40 = vld [vmem:[#allocation7 + $0x20] ss:$16 sps:$4 sm:$0xff]   ;;  %v1372_v42 = vld [vmem:[#allocation7 + $0x44] ss:$16 sps:$4 sm:$0xff]   ;;  %v1375_v43 = vld [vmem:[#allocation7 + $0x4c] ss:$16 sps:$4 sm:$0xff]  }
  0x6a   :  { %374 = vmatpush1.bf16.msra.mxu0 %v1330_v15  ;;  %447 = vmatpush1.bf16.msra.mxu1 %v1331_v16  ;;  %v1370_v45 = vld [vmem:[#allocation7 + $0x40] ss:$16 sps:$4 sm:$0xff]   ;;  %v1373_v46 = vld [vmem:[#allocation7 + $0x48] ss:$16 sps:$4 sm:$0xff]   ;;  %v1378_v47 = vld [vmem:[#allocation7 + $0x64] ss:$16 sps:$4 sm:$0xff]  }
  0x6b   :  { %375 = vmatprep.subr.bf16.mxu0 %v1332_v17  ;;  %448 = vmatprep.subr.bf16.mxu1 %v1334_v18  ;;  %v1381_v48 = vld [vmem:[#allocation7 + $0x6c] ss:$16 sps:$4 sm:$0xff]   ;;  %v1376_v49 = vld [vmem:[#allocation7 + $0x60] ss:$16 sps:$4 sm:$0xff]   ;;  %v1379_v50 = vld [vmem:[#allocation7 + $0x68] ss:$16 sps:$4 sm:$0xff]  }
  0x6c   :  { %v1385_v51 = vld [vmem:[#allocation7 + $0x84] ss:$16 sps:$4 sm:$0xff]   ;;  %v1388_v52 = vld [vmem:[#allocation7 + $0x8c] ss:$16 sps:$4 sm:$0xff]   ;;  %v1383_v54 = vld [vmem:[#allocation7 + $0x80] ss:$16 sps:$4 sm:$0xff]  }
  0x6d   :  { %v1382_v53 = vld [vmem:[#allocation2 + $0x10] sm:$0xff]   ;;  %v1386_v55 = vld [vmem:[#allocation7 + $0x88] ss:$16 sps:$4 sm:$0xff]   ;;  %v1394_v57 = vld [vmem:[#allocation7 + $0xac] ss:$16 sps:$4 sm:$0xff]   ;;  %v165_v8 = vsub.s32 0, %v1713_v7 }
  0x6e   :  { %376 = vmatpush1.bf16.msra.mxu0 %v1336_v19  ;;  %449 = vmatpush1.bf16.msra.mxu1 %v1337_v20  ;;  %v1391_v56 = vld [vmem:[#allocation7 + $0xa4] ss:$16 sps:$4 sm:$0xff]   ;;  %v1389_v58 = vld [vmem:[#allocation7 + $0xa0] ss:$16 sps:$4 sm:$0xff]   ;;  %v1392_v59 = vld [vmem:[#allocation7 + $0xa8] ss:$16 sps:$4 sm:$0xff]  }
  0x6f   :  { %377 = vmatprep.subr.bf16.mxu0 %v1338_v21  ;;  %450 = vmatprep.subr.bf16.mxu1 %v1340_v22  ;;  %v1398_v60 = vld [vmem:[#allocation7 + $0xc4] ss:$16 sps:$4 sm:$0xff]   ;;  %v1401_v61 = vld [vmem:[#allocation7 + $0xcc] ss:$16 sps:$4 sm:$0xff]   ;;  %v1396_v63 = vld [vmem:[#allocation7 + $0xc0] ss:$16 sps:$4 sm:$0xff]  }
  0x70   :  { %v1395_v62 = vld [vmem:[#allocation2 + $0x18] sm:$0xff]   ;;  %v1404_v2 = vld [vmem:[#allocation7 + $0xe4] ss:$16 sps:$4 sm:$0xff]   ;;  %v1402_v4 = vld [vmem:[#allocation7 + $0xe0] ss:$16 sps:$4 sm:$0xff]   ;;  %v173_v9 = vsub.s32 2, %v1713_v7 }
  0x71   :  { %v1399_v1 = vld [vmem:[#allocation7 + $0xc8] ss:$16 sps:$4 sm:$0xff]   ;;  %v1407_v3 = vld [vmem:[#allocation7 + $0xec] ss:$16 sps:$4 sm:$0xff]   ;;  %v161_v10 = vld [vmem:[#allocation8] sm:$0xf] }
  0x72   :  { %378 = vmatpush1.bf16.msra.mxu0 %v1342_v23  ;;  %451 = vmatpush1.bf16.msra.mxu1 %v1343_v24  ;;  %v1405_v5 = vld [vmem:[#allocation7 + $0xe8] ss:$16 sps:$4 sm:$0xff]   ;;  %v169_v11 = vsub.s32 1, %v1713_v7  ;;  %v177_v12 = vsub.s32 3, %v1713_v7  ;;  %v1721_v13 = vrot.slane %v161_v10, %v165_v8  ;;  %s1582_s4 = smov [#allocation11]  }
  0x73   :  { %379 = vmatprep.subr.bf16.mxu0 %v1344_v25  ;;  %452 = vmatprep.subr.bf16.mxu1 %v1346_v26  ;;  %s1134_s11 = sshll.u32 %s1582_s4, 4  ;;  %s1135_s11 = int_to_ptr.vmem [resolvable:$true] %s1134_s11 }
  0x74   :  { %v1729_v14 = vrot.slane %v161_v10, %v169_v11  ;;  %v1733_v15 = vrot.slane %v161_v10, %v177_v12  ;;  %s1518_s12 = scalar_lea.vmem %s1135_s11, 2048  ;;  %p1523_p13 = scmp.lt.s32.totalorder %s1135_s11, %s1135_s11 }
  0x75   :  { %p1519_p12 = scmp.ne.s32.totalorder %s1135_s11, %s1518_s12  ;;  %p1524_p0 = scmp.lt.s32.totalorder %s1518_s12, %s1518_s12 }
  0x76   :  { %380 = vmatpush1.bf16.msra.mxu0 %v1348_v27  ;;  %453 = vmatpush1.bf16.msra.mxu1 %v1349_v28 }
  0x77   :  { %381 = vmatprep.subr.bf16.mxu0 %v1350_v29  ;;  %454 = vmatprep.subr.bf16.mxu1 %v1352_v30  ;;  %p1525_p1 = por %p1524_p0, %p1523_p13 }
  0x79   :  { %p1526_p2 = pnand %p1525_p1, %p1519_p12 }
  0x7a   :  { %382 = vmatpush1.bf16.msra.mxu0 %v1354_v31  ;;  %455 = vmatpush1.bf16.msra.mxu1 %v1355_v32 }
  0x7b   :  { %695 = vmatprep.subr.bf16.mxu0 %v1359_v33  ;;  %768 = vmatprep.subr.bf16.mxu1 %v1362_v34 }
  0x7d   :  { %400 = vmatmul.mubr.bf16.vlgmr.msra.gmra.mrb[0].mxu0 %v1687_v35  ;;  %473 = vmatmul.mubr.bf16.vlgmr.msra.gmra.mrb[0].mxu1 %v1687_v35 }
  0x7e   :  { %696 = vmatpush1.bf16.msra.mxu0 %v1357_v36  ;;  %769 = vmatpush1.bf16.msra.mxu1 %v1360_v37 }
  0x7f   :  { %697 = vmatprep.subr.bf16.mxu0 %v1365_v38  ;;  %770 = vmatprep.subr.bf16.mxu1 %v1368_v39 }
  0x80   :  { %409 = vmatprep.mubr.bf16.mxu0 %v1581_v0  ;;  %482 = vmatprep.mubr.bf16.mxu1 %v1581_v0 }
  0x82   :  { %698 = vmatpush1.bf16.msra.mxu0 %v1363_v40  ;;  %771 = vmatpush1.bf16.msra.mxu1 %v1366_v41 }
  0x83   :  { %699 = vmatprep.subr.bf16.mxu0 %v1372_v42  ;;  %772 = vmatprep.subr.bf16.mxu1 %v1375_v43 }
  0x85   :  { %410 = vmatmul.mubr.bf16.gmra.mrb[4].mxu0 %v1693_v44  ;;  %483 = vmatmul.mubr.bf16.gmra.mrb[4].mxu1 %v1693_v44 }
  0x86   :  { %700 = vmatpush1.bf16.msra.mxu0 %v1370_v45  ;;  %773 = vmatpush1.bf16.msra.mxu1 %v1373_v46 }
  0x87   :  { %701 = vmatprep.subr.bf16.mxu0 %v1378_v47  ;;  %774 = vmatprep.subr.bf16.mxu1 %v1381_v48 }
  0x88   :  { %419 = vmatprep.mubr.bf16.mxu0 %v1581_v0  ;;  %492 = vmatprep.mubr.bf16.mxu1 %v1581_v0 }
  0x8a   :  { %702 = vmatpush1.bf16.msra.mxu0 %v1376_v49  ;;  %775 = vmatpush1.bf16.msra.mxu1 %v1379_v50 }
  0x8b   :  { %703 = vmatprep.subr.bf16.mxu0 %v1385_v51  ;;  %776 = vmatprep.subr.bf16.mxu1 %v1388_v52 }
  0x8d   :  { %420 = vmatmul.mubr.bf16.gmra.mrb[8].mxu0 %v1382_v53  ;;  %493 = vmatmul.mubr.bf16.gmra.mrb[8].mxu1 %v1382_v53 }
  0x8e   :  { %704 = vmatpush1.bf16.msra.mxu0 %v1383_v54  ;;  %777 = vmatpush1.bf16.msra.mxu1 %v1386_v55 }
  0x8f   :  { %705 = vmatprep.subr.bf16.mxu0 %v1391_v56  ;;  %778 = vmatprep.subr.bf16.mxu1 %v1394_v57 }
  0x90   :  { %429 = vmatprep.mubr.bf16.mxu0 %v1581_v0  ;;  %502 = vmatprep.mubr.bf16.mxu1 %v1581_v0 }
  0x92   :  { %706 = vmatpush1.bf16.msra.mxu0 %v1389_v58  ;;  %779 = vmatpush1.bf16.msra.mxu1 %v1392_v59 }
  0x93   :  { %707 = vmatprep.subr.bf16.mxu0 %v1398_v60  ;;  %780 = vmatprep.subr.bf16.mxu1 %v1401_v61 }
  0x95   :  { %430 = vmatmul.mubr.bf16.gmra.mrb[12].mxu0 %v1395_v62  ;;  %503 = vmatmul.mubr.bf16.gmra.mrb[12].mxu1 %v1395_v62 }
  0x96   :  { %708 = vmatpush1.bf16.msra.mxu0 %v1396_v63  ;;  %781 = vmatpush1.bf16.msra.mxu1 %v1399_v1 }
  0x97   :  { %709 = vmatprep.subr.bf16.mxu0 %v1404_v2  ;;  %782 = vmatprep.subr.bf16.mxu1 %v1407_v3 }
  0x98   :  { %727 = vmatprep.mubr.bf16.mxu0 %v1581_v0  ;;  %800 = vmatprep.mubr.bf16.mxu1 %v1581_v0 }
  0x9a   :  { %710 = vmatpush1.bf16.msra.mxu0 %v1402_v4  ;;  %783 = vmatpush1.bf16.msra.mxu1 %v1405_v5 }
  0x9d   :  { %728 = vmatmul.mubr.bf16.vlgmr.msra.gmra.mrb[16].mxu0 %v1687_v35  ;;  %801 = vmatmul.mubr.bf16.vlgmr.msra.gmra.mrb[16].mxu1 %v1687_v35 }
  0x9e   :  { %737 = vmatprep.mubr.bf16.mxu0 %v1581_v0  ;;  %810 = vmatprep.mubr.bf16.mxu1 %v1581_v0 }
  0xa5   :  { %738 = vmatmul.mubr.bf16.gmra.mrb[20].mxu0 %v1693_v44  ;;  %811 = vmatmul.mubr.bf16.gmra.mrb[20].mxu1 %v1693_v44 }
  0xa6   :  { %747 = vmatprep.mubr.bf16.mxu0 %v1581_v0  ;;  %820 = vmatprep.mubr.bf16.mxu1 %v1581_v0 }
  0xad   :  { %748 = vmatmul.mubr.bf16.gmra.mrb[24].mxu0 %v1382_v53  ;;  %821 = vmatmul.mubr.bf16.gmra.mrb[24].mxu1 %v1382_v53 }
  0xae   :  { %757 = vmatprep.mubr.bf16.mxu0 %v1581_v0  ;;  %830 = vmatprep.mubr.bf16.mxu1 %v1581_v0  ;;  %v1725_v0 = vrot.slane %v161_v10, %v173_v9 }
  0xb5   :  { %758 = vmatmul.mubr.bf16.gmra.mrb[28].mxu0 %v1395_v62  ;;  %831 = vmatmul.mubr.bf16.gmra.mrb[28].mxu1 %v1395_v62 }
 0x150   :  { %v401_v16 = vpop.f32.mrb[0].mxu0  ;;  %v474_v17 = vpop.f32.mrb[0].mxu1 }
 0x151   :  { %v402_v18 = vadd.f32 %v401_v16, %v1721_v13  ;;  %v475_v19 = vadd.f32 %v474_v17, %v1725_v0  ;;  %v403_v20 = vpop.f32.mrb[1].mxu0  ;;  %v476_v21 = vpop.f32.mrb[1].mxu1 }
 0x152   :  { %v404_v22 = vadd.f32 %v403_v20, %v1729_v14  ;;  %v477_v23 = vadd.f32 %v476_v21, %v1733_v15  ;;  %v405_v24 = vpop.f32.mrb[2].mxu0  ;;  %v478_v25 = vpop.f32.mrb[2].mxu1 }
 0x153   :  { %v406_v26 = vadd.f32 %v405_v24, %v1721_v13  ;;  %v479_v27 = vadd.f32 %v478_v25, %v1725_v0  ;;  %v407_v28 = vpop.f32.mrb[3].mxu0  ;;  %v480_v29 = vpop.f32.mrb[3].mxu1 }
 0x154   :  { %v1264_v30 = vpack.c.bf16 %v404_v22, %v402_v18  ;;  %v1265_v31 = vpack.c.bf16 %v477_v23, %v475_v19  ;;  %v408_v32 = vadd.f32 %v407_v28, %v1729_v14  ;;  %v481_v33 = vadd.f32 %v480_v29, %v1733_v15 }
 0x156   :  { %969 = vst [vmem:[#allocation11] sm:$0xff] %v1264_v30  ;;  %970 = vst [vmem:[#allocation11 + $0x8] sm:$0xff] %v1265_v31  ;;  %v1266_v34 = vpack.c.bf16 %v408_v32, %v406_v26  ;;  %v1267_v35 = vpack.c.bf16 %v481_v33, %v479_v27  ;;  %v513_v31 = vld [vmem:[#allocation10] sm:$0xf] }
 0x158   :  { %971 = vst [vmem:[#allocation11 + $0x10] sm:$0xff] %v1266_v34  ;;  %972 = vst [vmem:[#allocation11 + $0x18] sm:$0xff] %v1267_v35  ;;  %v411_v36 = vpop.f32.mrb[4].mxu0  ;;  %v484_v37 = vpop.f32.mrb[4].mxu1 }
 0x159   :  { %v412_v38 = vadd.f32 %v411_v36, %v1721_v13  ;;  %v485_v39 = vadd.f32 %v484_v37, %v1725_v0  ;;  %v413_v40 = vpop.f32.mrb[5].mxu0  ;;  %v486_v41 = vpop.f32.mrb[5].mxu1 }
 0x15a   :  { %v414_v42 = vadd.f32 %v413_v40, %v1729_v14  ;;  %v487_v43 = vadd.f32 %v486_v41, %v1733_v15  ;;  %v415_v44 = vpop.f32.mrb[6].mxu0  ;;  %v488_v45 = vpop.f32.mrb[6].mxu1  ;;  %v1769_v40 = vrot.slane %v513_v31, %v165_v8  ;;  %v1773_v41 = vrot.slane %v513_v31, %v173_v9 }
 0x15b   :  { %v416_v46 = vadd.f32 %v415_v44, %v1721_v13  ;;  %v489_v47 = vadd.f32 %v488_v45, %v1725_v0  ;;  %v417_v48 = vpop.f32.mrb[7].mxu0  ;;  %v490_v49 = vpop.f32.mrb[7].mxu1 }
 0x15c   :  { %v1268_v50 = vpack.c.bf16 %v414_v42, %v412_v38  ;;  %v1269_v51 = vpack.c.bf16 %v487_v43, %v485_v39  ;;  %v418_v52 = vadd.f32 %v417_v48, %v1729_v14  ;;  %v491_v53 = vadd.f32 %v490_v49, %v1733_v15 }
 0x15d   :  { %v1777_v42 = vrot.slane %v513_v31, %v169_v11 }
 0x15e   :  { %973 = vst [vmem:[#allocation11 + $0x20] sm:$0xff] %v1268_v50  ;;  %974 = vst [vmem:[#allocation11 + $0x28] sm:$0xff] %v1269_v51  ;;  %v1270_v54 = vpack.c.bf16 %v418_v52, %v416_v46  ;;  %v1271_v55 = vpack.c.bf16 %v491_v53, %v489_v47 }
 0x160   :  { %975 = vst [vmem:[#allocation11 + $0x30] sm:$0xff] %v1270_v54  ;;  %976 = vst [vmem:[#allocation11 + $0x38] sm:$0xff] %v1271_v55  ;;  %v421_v56 = vpop.f32.mrb[8].mxu0  ;;  %v494_v57 = vpop.f32.mrb[8].mxu1 }
 0x161   :  { %v422_v58 = vadd.f32 %v421_v56, %v1721_v13  ;;  %v495_v59 = vadd.f32 %v494_v57, %v1725_v0  ;;  %v423_v60 = vpop.f32.mrb[9].mxu0  ;;  %v496_v61 = vpop.f32.mrb[9].mxu1 }
 0x162   :  { %v424_v62 = vadd.f32 %v423_v60, %v1729_v14  ;;  %v497_v63 = vadd.f32 %v496_v61, %v1733_v15  ;;  %v425_v1 = vpop.f32.mrb[10].mxu0  ;;  %v498_v2 = vpop.f32.mrb[10].mxu1 }
 0x163   :  { %v426_v3 = vadd.f32 %v425_v1, %v1721_v13  ;;  %v499_v4 = vadd.f32 %v498_v2, %v1725_v0  ;;  %v427_v5 = vpop.f32.mrb[11].mxu0  ;;  %v500_v6 = vpop.f32.mrb[11].mxu1 }
 0x164   :  { %v1272_v10 = vpack.c.bf16 %v424_v62, %v422_v58  ;;  %v1273_v16 = vpack.c.bf16 %v497_v63, %v495_v59  ;;  %v428_v17 = vadd.f32 %v427_v5, %v1729_v14  ;;  %v501_v18 = vadd.f32 %v500_v6, %v1733_v15 }
 0x166   :  { %977 = vst [vmem:[#allocation11 + $0x40] sm:$0xff] %v1272_v10  ;;  %978 = vst [vmem:[#allocation11 + $0x48] sm:$0xff] %v1273_v16  ;;  %v1274_v19 = vpack.c.bf16 %v428_v17, %v426_v3  ;;  %v1275_v20 = vpack.c.bf16 %v501_v18, %v499_v4 }
 0x168   :  { %979 = vst [vmem:[#allocation11 + $0x50] sm:$0xff] %v1274_v19  ;;  %980 = vst [vmem:[#allocation11 + $0x58] sm:$0xff] %v1275_v20  ;;  %v431_v21 = vpop.f32.mrb[12].mxu0  ;;  %v504_v22 = vpop.f32.mrb[12].mxu1 }
 0x169   :  { %v432_v23 = vadd.f32 %v431_v21, %v1721_v13  ;;  %v505_v24 = vadd.f32 %v504_v22, %v1725_v0  ;;  %v433_v25 = vpop.f32.mrb[13].mxu0  ;;  %v506_v26 = vpop.f32.mrb[13].mxu1 }
 0x16a   :  { %v434_v27 = vadd.f32 %v433_v25, %v1729_v14  ;;  %v507_v28 = vadd.f32 %v506_v26, %v1733_v15  ;;  %v435_v29 = vpop.f32.mrb[14].mxu0  ;;  %v508_v30 = vpop.f32.mrb[14].mxu1 }
 0x16b   :  { %v436_v32 = vadd.f32 %v435_v29, %v1721_v13  ;;  %v509_v33 = vadd.f32 %v508_v30, %v1725_v0  ;;  %v437_v34 = vpop.f32.mrb[15].mxu0  ;;  %v510_v35 = vpop.f32.mrb[15].mxu1 }
 0x16c   :  { %v1276_v36 = vpack.c.bf16 %v434_v27, %v432_v23  ;;  %v1277_v37 = vpack.c.bf16 %v507_v28, %v505_v24  ;;  %v438_v38 = vadd.f32 %v437_v34, %v1729_v14  ;;  %v511_v39 = vadd.f32 %v510_v35, %v1733_v15 }
 0x16d   :  { %v1781_v14 = vrot.slane %v513_v31, %v177_v12 }
 0x16e   :  { %981 = vst [vmem:[#allocation11 + $0x60] sm:$0xff] %v1276_v36  ;;  %982 = vst [vmem:[#allocation11 + $0x68] sm:$0xff] %v1277_v37  ;;  %v1278_v13 = vpack.c.bf16 %v438_v38, %v436_v32  ;;  %v1279_v0 = vpack.c.bf16 %v511_v39, %v509_v33 }
 0x170   :  { %983 = vst [vmem:[#allocation11 + $0x70] sm:$0xff] %v1278_v13  ;;  %984 = vst [vmem:[#allocation11 + $0x78] sm:$0xff] %v1279_v0  ;;  %v729_v8 = vpop.f32.mrb[16].mxu0  ;;  %v802_v15 = vpop.f32.mrb[16].mxu1 }
 0x171   :  { %v730_v9 = vadd.f32 %v729_v8, %v1769_v40  ;;  %v803_v43 = vadd.f32 %v802_v15, %v1773_v41  ;;  %v731_v44 = vpop.f32.mrb[17].mxu0  ;;  %v804_v45 = vpop.f32.mrb[17].mxu1 }
 0x172   :  { %1529 = shalt.err (!%p1526_p2)
}
 0x173   :  { %s1530_s16 = scalar_lea.hbm %s1850_s5, 2048 }
 0x174   :  { %p1531_p3 = scmp.ne.s32.totalorder %s1850_s5, %s1530_s16  ;;  %p1534_p4 = scmp.lt.u32.totalorder %s1530_s16, %s1850_s5 }
 0x176   :  { %p1536_p5 = pnand %p1534_p4, %p1531_p3 }
 0x178   :  { %1539 = shalt.err (!%p1536_p5)
}
 0x179   :  { %1140 = dma.vmem_to_hbm [thread:$0]  %s1135_s11, 2048, %s1850_s5, [#allocation4], %s1573_s7, %s1573_s7, %s1574_s8   ;;  %v732_v7 = vadd.f32 %v731_v44, %v1777_v42  ;;  %v805_v11 = vadd.f32 %v804_v45, %v1781_v14  ;;  %v733_v12 = vpop.f32.mrb[18].mxu0  ;;  %v806_v46 = vpop.f32.mrb[18].mxu1 }
 0x17a   :  { %v734_v47 = vadd.f32 %v733_v12, %v1769_v40  ;;  %v807_v48 = vadd.f32 %v806_v46, %v1773_v41  ;;  %v735_v49 = vpop.f32.mrb[19].mxu0  ;;  %v808_v50 = vpop.f32.mrb[19].mxu1  ;;  %s1583_s5 = smov [#allocation12]  }
 0x17b   :  { %v1280_v51 = vpack.c.bf16 %v732_v7, %v730_v9  ;;  %v1281_v52 = vpack.c.bf16 %v805_v11, %v803_v43  ;;  %v736_v53 = vadd.f32 %v735_v49, %v1777_v42  ;;  %v809_v54 = vadd.f32 %v808_v50, %v1781_v14  ;;  %v739_v57 = vpop.f32.mrb[20].mxu0  ;;  %v812_v58 = vpop.f32.mrb[20].mxu1  ;;  %s1146_s22 = sshll.u32 %s1583_s5, 4  ;;  %s1147_s22 = int_to_ptr.vmem [resolvable:$true] %s1146_s22 }
 0x17c   :  { %v740_v59 = vadd.f32 %v739_v57, %v1769_v40  ;;  %v813_v60 = vadd.f32 %v812_v58, %v1773_v41  ;;  %v741_v61 = vpop.f32.mrb[21].mxu0  ;;  %v814_v62 = vpop.f32.mrb[21].mxu1  ;;  %s1540_s23 = scalar_lea.vmem %s1147_s22, 2048  ;;  %p1545_p7 = scmp.lt.s32.totalorder %s1147_s22, %s1147_s22 }
 0x17d   :  { %1113 = vst [vmem:[#allocation12] sm:$0xff] %v1280_v51  ;;  %1114 = vst [vmem:[#allocation12 + $0x8] sm:$0xff] %v1281_v52  ;;  %v1282_v55 = vpack.c.bf16 %v736_v53, %v734_v47  ;;  %v1283_v56 = vpack.c.bf16 %v809_v54, %v807_v48  ;;  %v742_v63 = vadd.f32 %v741_v61, %v1777_v42  ;;  %v743_v2 = vpop.f32.mrb[22].mxu0  ;;  %v816_v3 = vpop.f32.mrb[22].mxu1  ;;  %p1541_p6 = scmp.ne.s32.totalorder %s1147_s22, %s1540_s23  ;;  %p1546_p8 = scmp.lt.s32.totalorder %s1540_s23, %s1540_s23 }
 0x17e   :  { %v815_v1 = vadd.f32 %v814_v62, %v1781_v14  ;;  %v744_v4 = vadd.f32 %v743_v2, %v1769_v40  ;;  %v817_v5 = vadd.f32 %v816_v3, %v1773_v41  ;;  %v745_v6 = vpop.f32.mrb[23].mxu0  ;;  %v818_v10 = vpop.f32.mrb[23].mxu1 }
 0x17f   :  { %1115 = vst [vmem:[#allocation12 + $0x10] sm:$0xff] %v1282_v55  ;;  %1116 = vst [vmem:[#allocation12 + $0x18] sm:$0xff] %v1283_v56  ;;  %v1284_v16 = vpack.c.bf16 %v742_v63, %v740_v59  ;;  %v746_v18 = vadd.f32 %v745_v6, %v1777_v42  ;;  %v819_v19 = vadd.f32 %v818_v10, %v1781_v14  ;;  %p1547_p9 = por %p1546_p8, %p1545_p7 }
 0x180   :  { %v1285_v17 = vpack.c.bf16 %v815_v1, %v813_v60  ;;  %v749_v22 = vpop.f32.mrb[24].mxu0  ;;  %v822_v23 = vpop.f32.mrb[24].mxu1 }
 0x181   :  { %1117 = vst [vmem:[#allocation12 + $0x20] sm:$0xff] %v1284_v16  ;;  %v1286_v20 = vpack.c.bf16 %v746_v18, %v744_v4  ;;  %v1287_v21 = vpack.c.bf16 %v819_v19, %v817_v5  ;;  %v750_v24 = vadd.f32 %v749_v22, %v1769_v40  ;;  %v823_v25 = vadd.f32 %v822_v23, %v1773_v41  ;;  %v751_v26 = vpop.f32.mrb[25].mxu0  ;;  %v824_v27 = vpop.f32.mrb[25].mxu1  ;;  %p1548_p10 = pnand %p1547_p9, %p1541_p6 }
 0x182   :  { %1118 = vst [vmem:[#allocation12 + $0x28] sm:$0xff] %v1285_v17  ;;  %v752_v28 = vadd.f32 %v751_v26, %v1777_v42  ;;  %v825_v29 = vadd.f32 %v824_v27, %v1781_v14  ;;  %v753_v30 = vpop.f32.mrb[26].mxu0  ;;  %v826_v31 = vpop.f32.mrb[26].mxu1 }
 0x183   :  { %1119 = vst [vmem:[#allocation12 + $0x30] sm:$0xff] %v1286_v20  ;;  %1120 = vst [vmem:[#allocation12 + $0x38] sm:$0xff] %v1287_v21  ;;  %v754_v32 = vadd.f32 %v753_v30, %v1769_v40  ;;  %v827_v33 = vadd.f32 %v826_v31, %v1773_v41  ;;  %v755_v34 = vpop.f32.mrb[27].mxu0  ;;  %v828_v35 = vpop.f32.mrb[27].mxu1 }
 0x184   :  { %v1288_v36 = vpack.c.bf16 %v752_v28, %v750_v24  ;;  %v1289_v37 = vpack.c.bf16 %v825_v29, %v823_v25  ;;  %v756_v38 = vadd.f32 %v755_v34, %v1777_v42  ;;  %v829_v39 = vadd.f32 %v828_v35, %v1781_v14 }
 0x186   :  { %1121 = vst [vmem:[#allocation12 + $0x40] sm:$0xff] %v1288_v36  ;;  %1122 = vst [vmem:[#allocation12 + $0x48] sm:$0xff] %v1289_v37  ;;  %v1290_v13 = vpack.c.bf16 %v756_v38, %v754_v32  ;;  %v1291_v0 = vpack.c.bf16 %v829_v39, %v827_v33 }
 0x188   :  { %1123 = vst [vmem:[#allocation12 + $0x50] sm:$0xff] %v1290_v13  ;;  %1124 = vst [vmem:[#allocation12 + $0x58] sm:$0xff] %v1291_v0  ;;  %v759_v8 = vpop.f32.mrb[28].mxu0  ;;  %v832_v15 = vpop.f32.mrb[28].mxu1 }
 0x189   :  { %v760_v9 = vadd.f32 %v759_v8, %v1769_v40  ;;  %v833_v43 = vadd.f32 %v832_v15, %v1773_v41  ;;  %v761_v44 = vpop.f32.mrb[29].mxu0  ;;  %v834_v45 = vpop.f32.mrb[29].mxu1 }
 0x18a   :  { %v762_v7 = vadd.f32 %v761_v44, %v1777_v42  ;;  %v835_v11 = vadd.f32 %v834_v45, %v1781_v14  ;;  %v763_v12 = vpop.f32.mrb[30].mxu0  ;;  %v836_v46 = vpop.f32.mrb[30].mxu1 }
 0x18b   :  { %v764_v47 = vadd.f32 %v763_v12, %v1769_v40  ;;  %v837_v48 = vadd.f32 %v836_v46, %v1773_v41  ;;  %v765_v49 = vpop.f32.mrb[31].mxu0  ;;  %v838_v50 = vpop.f32.mrb[31].mxu1 }
 0x18c   :  { %v1292_v51 = vpack.c.bf16 %v762_v7, %v760_v9  ;;  %v1293_v52 = vpack.c.bf16 %v835_v11, %v833_v43  ;;  %v766_v53 = vadd.f32 %v765_v49, %v1777_v42  ;;  %v839_v54 = vadd.f32 %v838_v50, %v1781_v14 }
 0x18e   :  { %1125 = vst [vmem:[#allocation12 + $0x60] sm:$0xff] %v1292_v51  ;;  %1126 = vst [vmem:[#allocation12 + $0x68] sm:$0xff] %v1293_v52  ;;  %v1294_v55 = vpack.c.bf16 %v766_v53, %v764_v47  ;;  %v1295_v56 = vpack.c.bf16 %v839_v54, %v837_v48 }
 0x190   :  { %1127 = vst [vmem:[#allocation12 + $0x70] sm:$0xff] %v1294_v55  ;;  %1128 = vst [vmem:[#allocation12 + $0x78] sm:$0xff] %v1295_v56 }
 0x191   :  { %1551 = shalt.err (!%p1548_p10)
}
 0x192   :  { %s1552_s24 = scalar_lea.hbm %s1851_s6, 2048 }
 0x193   :  { %p1553_p11 = scmp.ne.s32.totalorder %s1851_s6, %s1552_s24  ;;  %p1556_p12 = scmp.lt.u32.totalorder %s1552_s24, %s1851_s6 }
 0x195   :  { %p1558_p13 = pnand %p1556_p12, %p1553_p11 }
 0x197   :  { %1561 = shalt.err (!%p1558_p13)
}
 0x198   :  { %1152 = dma.vmem_to_hbm [thread:$0]  %s1147_s22, 2048, %s1851_s6, [#allocation13], %s1573_s7, %s1573_s7, %s1574_s8  }
 0x199   :  { %1568 = dma.done.wait [#allocation4], 2048  }
 0x19a   :  { %1569 = vsyncadd [#allocation4], 4294965248 }
 0x19b   :  { %1570 = dma.done.wait [#allocation13], 2048  }
 0x19c   :  { %1571 = vsyncadd [#allocation13], 4294965248 }
 0x19d   :  { %1159 = vsyncpa [#allocation3], 1 }
 0x19e   :  { %1160 = vsyncpa [#allocation6], 1 }
 0x19f   :  { %1161 = vsyncpa [#allocation9], 1 }
 0x1a0   :  { %1162 = vsyncpa [#allocation4], 1 }
 0x1a1   :  { %1163 = vsyncpa [#allocation13], 1 }

</bundles_post_ra>
